<compile_context>
chip_gen: v5e
topology: v5e:2x2
jax: 0.10.0
libtpu: 0.0.40
codegen_flags: <defaults>
</compile_context>

<pallas_src>
import numpy as np
import jax
import jax.numpy as jnp
from jax.experimental import pallas as pl
from jax.experimental.pallas import tpu as pltpu


LANE = 128


def _round_up(x, m):
    return ((x + m - 1) // m) * m


# ----------------------------------------------------------------------------
# Fused Pallas kernel: full MAF forward (all blocks) for one batch tile,
# batch-in-lanes layout.
#   for each block (already in reversed application order):
#     y      = concat-MADE(x)           (3 matmuls, pre-masked block weights)
#     m      = y[:D, :], log_s = y[D:, :]          (sublane-aligned split)
#     x      = (x - m) * exp(-log_s)
#     logdet += sum(log_s, axis=0)                 (XLU cross-sublane reduce)
# ----------------------------------------------------------------------------
def make_maf_kernel(num_layers, num_blocks, input_dim, layer_in_dims):
    def kernel(*args):
        x_ref = args[0]
        wb_refs = args[1:1 + num_layers]         # stacked (NB, out_l, in_l+1)
        u_ref = args[1 + num_layers]
        ld_ref = args[2 + num_layers]

        x = x_ref[...]                                  # (D, tile_b)
        ld = jnp.zeros((1, x.shape[1]), jnp.float32)    # (1, tile_b)

        # num_blocks is small & static -> full unroll (LLO scheduler visibility).
        for blk in range(num_blocks):
            h = x
            for l in range(num_layers):
                in_l = layer_in_dims[l]
                wb = wb_refs[l][blk]                    # (out_l, in_l + 1)
                w = wb[:, :in_l]                        # (out_l, in_l)
                b = wb[:, in_l:in_l + 1]                # (out_l, 1)
                h = jnp.dot(w, h, preferred_element_type=jnp.float32) + b
                if l < num_layers - 1:
                    h = jnp.maximum(h, 0.0)
            m = h[:input_dim, :]                        # (D, tile_b)
            log_s = h[input_dim:, :]                    # (D, tile_b)
            x = (x - m) * jnp.exp(-log_s)
            ld = ld + jnp.sum(log_s, axis=0, keepdims=True)

        u_ref[...] = x
        ld_ref[...] = ld

    return kernel


# ----------------------------------------------------------------------------
# Parameter setup (plain JAX / numpy glue): MADE masks + deterministic init
# ----------------------------------------------------------------------------
def made_masks(input_dim, hidden_dims, order):
    """Standard MADE masks, (in, out) layout. order: input degrees in 1..D."""
    D = input_dim
    degrees = [np.asarray(order, dtype=np.int64)]
    for h in hidden_dims:
        degrees.append(np.arange(h) % max(1, D - 1) + 1)
    masks = []
    for l in range(len(hidden_dims)):
        m_in, m_out = degrees[l], degrees[l + 1]
        masks.append((m_out[None, :] >= m_in[:, None]).astype(np.float32))
    # output layer: strict inequality against the last hidden degrees
    masks.append((degrees[0][None, :] > degrees[-1][:, None]).astype(np.float32))
    return masks


def init_made_params(key, input_dim, hidden_dims, order):
    dims = [input_dim] + list(hidden_dims) + [input_dim]
    masks = made_masks(input_dim, hidden_dims, order)
    params = []
    for l in range(len(dims) - 1):
        key, wk, bk = jax.random.split(key, 3)
        w = 0.1 * jax.random.normal(wk, (dims[l], dims[l + 1]), dtype=jnp.float32)
        b = 0.01 * jax.random.normal(bk, (1, dims[l + 1]), dtype=jnp.float32)
        params.append((w * jnp.asarray(masks[l]), b))
    return key, params


def init_maf_params(key, input_dim, hidden_dims, num_blocks):
    blocks = []
    for i in range(num_blocks):
        reverse = (i % 2 == 0)
        order = (np.arange(input_dim, 0, -1) if reverse
                 else np.arange(1, input_dim + 1))
        key, mean_p = init_made_params(key, input_dim, hidden_dims, order)
        key, scale_p = init_made_params(key, input_dim, hidden_dims, order)
        blocks.append({"mean": mean_p, "scale": scale_p})
    return blocks


def _concat_block_params(mean_p, scale_p):
    """Fuse mean-MADE and scale-MADE into one MLP per block.

    Layer 0: W = [mW | sW] (D, 2*H1).  Deeper layers: block-diagonal so the
    mean / scale paths never mix.  Biases are concatenated.  (in, out) layout.
    """
    out = []
    for l, ((mw, mb), (sw, sb)) in enumerate(zip(mean_p, scale_p)):
        if l == 0:
            w = jnp.concatenate([mw, sw], axis=1)
        else:
            ih, oh = mw.shape
            w = jnp.zeros((2 * ih, 2 * oh), jnp.float32)
            w = w.at[:ih, :oh].set(mw).at[ih:, oh:].set(sw)
        b = jnp.concatenate([mb, sb], axis=1)
        out.append((w, b))
    return out


# ----------------------------------------------------------------------------
# MAF forward wrapper: one fused pallas_call over a batch-tiled parallel grid,
# batch-in-lanes layout.
# ----------------------------------------------------------------------------
def maf_forward(x, blocks, tile_b=2048):
    B, D = x.shape
    num_blocks = len(blocks)
    num_layers = len(blocks[0]["mean"])

    # Build stacked, transposed, bias-fused per-layer weights across blocks,
    # in the order the forward applies them (reversed(self.blocks)).
    per_layer = [[] for _ in range(num_layers)]
    layer_in_dims = None
    for blk in reversed(blocks):
        cat = _concat_block_params(blk["mean"], blk["scale"])
        if layer_in_dims is None:
            layer_in_dims = [int(w.shape[0]) for (w, _) in cat]
        for l, (w, b) in enumerate(cat):
            # batch-in-lanes: h_new = W^T @ h + b^T  ->  pack [W^T | b^T]
            per_layer[l].append(jnp.concatenate([w.T, b.T], axis=1))
    stacked = [jnp.stack(per_layer[l]) for l in range(num_layers)]  # (NB, out, in+1)

    # Lane-dense batch tiling (tile_b multiple of 128 lanes).
    b_min = _round_up(max(B, 1), LANE)
    tb = max(LANE, min(_round_up(tile_b, LANE), b_min))
    # v7x megacore: prefer >= 2 grid steps when the batch is large enough.
    if b_min >= 2 * LANE:
        tb = min(tb, _round_up(pl.cdiv(b_min, 2), LANE))
    Bp = _round_up(b_min, tb)
    grid = (Bp // tb,)

    # Transpose to (D, B) and pad the lane (batch) dimension with zeros.
    x_t = jnp.pad(x.T.astype(jnp.float32), ((0, 0), (0, Bp - B)))

    in_specs = [pl.BlockSpec((D, tb), lambda i: (0, i))]
    for arr in stacked:   # full-array blocks, constant index_map -> VMEM-resident
        in_specs.append(pl.BlockSpec(arr.shape, lambda i: (0, 0, 0)))

    out_specs = (pl.BlockSpec((D, tb), lambda i: (0, i)),
                 pl.BlockSpec((1, tb), lambda i: (0, i)))
    out_shape = (jax.ShapeDtypeStruct((D, Bp), jnp.float32),
                 jax.ShapeDtypeStruct((1, Bp), jnp.float32))

    u_t, ld_t = pl.pallas_call(
        make_maf_kernel(num_layers, num_blocks, D, layer_in_dims),
        grid=grid,
        in_specs=in_specs,
        out_specs=out_specs,
        out_shape=out_shape,
        compiler_params=pltpu.CompilerParams(
            dimension_semantics=("parallel",)),
    )(x_t, *stacked)

    u = u_t[:, :B].T
    log_det = ld_t[0, :B]
    return u, log_det


# ----------------------------------------------------------------------------
# Pure-JAX reference (mirrors the PyTorch module; correctness check only)
# ----------------------------------------------------------------------------
def _made_ref(x, params):
    h = x
    n = len(params)
    for l, (w, b) in enumerate(params):
        h = h @ w + b
        if l < n - 1:
            h = jnp.maximum(h, 0.0)
    return h


def maf_forward_ref(x, blocks):
    _x = x
    log_det = jnp.zeros_like(x)
    for block in reversed(blocks):
        m = _made_ref(_x, block["mean"])
        log_s = _made_ref(_x, block["scale"])
        _x = (_x - m) / jnp.exp(log_s)
        log_det = log_det + log_s
    return _x, jnp.sum(log_det, axis=-1)


if __name__ == "__main__":
    BATCH = 8
    INPUT_DIM = 8
    HIDDEN_DIMS = [32, 32]
    NUM_BLOCKS = 3

    key = jax.random.PRNGKey(0)
    key, xk = jax.random.split(key)
    x = jax.random.normal(xk, (BATCH, INPUT_DIM), dtype=jnp.float32)

    blocks = init_maf_params(key, INPUT_DIM, HIDDEN_DIMS, NUM_BLOCKS)

    u, log_det = maf_forward(x, blocks)
    u = jax.block_until_ready(u)
    log_det = jax.block_until_ready(log_det)

    u_ref, log_det_ref = maf_forward_ref(x, blocks)
    np.testing.assert_allclose(np.asarray(u), np.asarray(u_ref),
                               rtol=1e-5, atol=1e-5)
    np.testing.assert_allclose(np.asarray(log_det), np.asarray(log_det_ref),
                               rtol=1e-5, atol=1e-5)

    print("KERNEL_OK")
</pallas_src>

<mosaic_0001>
module attributes {stable_mosaic.version = 11 : i64} {
  func.func @kernel(%arg0: i32, %arg1: memref<8x128xf32, #tpu.memory_space<vmem>>, %arg2: memref<3x64x9xf32, #tpu.memory_space<vmem>>, %arg3: memref<3x64x65xf32, #tpu.memory_space<vmem>>, %arg4: memref<3x16x65xf32, #tpu.memory_space<vmem>>, %arg5: memref<8x128xf32, #tpu.memory_space<vmem>>, %arg6: memref<1x128xf32, #tpu.memory_space<vmem>>) attributes {dimension_semantics = [#tpu.dimension_semantics<parallel>], iteration_bounds = array<i64: 1>, scalar_prefetch = 0 : i64, scratch_operands = 0 : i64, tpu.core_type = #tpu.core_type<tc>, window_params = [{transform_indices = @transform_0, window_bounds = array<i64: 8, 128>}, {pipeline_mode = #tpu.pipeline_mode<synchronous>, transform_indices = @transform_1, window_bounds = array<i64: 3, 64, 9>}, {pipeline_mode = #tpu.pipeline_mode<synchronous>, transform_indices = @transform_2, window_bounds = array<i64: 3, 64, 65>}, {pipeline_mode = #tpu.pipeline_mode<synchronous>, transform_indices = @transform_3, window_bounds = array<i64: 3, 16, 65>}, {transform_indices = @transform_4, window_bounds = array<i64: 8, 128>}, {transform_indices = @transform_5, window_bounds = array<i64: 1, 128>}]} {
    %c0 = arith.constant 0 : index
    %c0_0 = arith.constant 0 : index
    %0 = vector.load %arg1[%c0, %c0_0] : memref<8x128xf32, #tpu.memory_space<vmem>>, vector<8x128xf32>
    %cst = arith.constant 0.000000e+00 : f32
    %1 = vector.broadcast %cst : f32 to vector<1x128xf32>
    %c0_1 = arith.constant 0 : index
    %c0_2 = arith.constant 0 : index
    %c0_3 = arith.constant 0 : index
    %2 = vector.load %arg2[%c0_1, %c0_2, %c0_3] : memref<3x64x9xf32, #tpu.memory_space<vmem>>, vector<1x64x9xf32>
    %3 = vector.shape_cast %2 : vector<1x64x9xf32> to vector<64x9xf32>
    %4 = vector.extract_strided_slice %3 {offsets = [0, 0], sizes = [64, 8], strides = [1, 1]} : vector<64x9xf32> to vector<64x8xf32>
    %5 = vector.extract_strided_slice %3 {offsets = [0, 8], sizes = [64, 1], strides = [1, 1]} : vector<64x9xf32> to vector<64x1xf32>
    %cst_4 = arith.constant dense<0.000000e+00> : vector<64x128xf32>
    %6 = tpu.matmul %4, %0, %cst_4 {dimension_numbers = #tpu.dot_dimension_numbers<[1], [0], [0], [1], [0, 0, 1, 1], [], []>} : vector<64x8xf32>, vector<8x128xf32>, vector<64x128xf32> -> vector<64x128xf32>
    %7 = vector.broadcast %5 : vector<64x1xf32> to vector<64x128xf32>
    %8 = arith.addf %6, %7 : vector<64x128xf32>
    %cst_5 = arith.constant 0.000000e+00 : f32
    %9 = vector.broadcast %cst_5 : f32 to vector<64x128xf32>
    %10 = arith.maximumf %8, %9 : vector<64x128xf32>
    %c0_6 = arith.constant 0 : index
    %c0_7 = arith.constant 0 : index
    %c0_8 = arith.constant 0 : index
    %11 = vector.load %arg3[%c0_6, %c0_7, %c0_8] : memref<3x64x65xf32, #tpu.memory_space<vmem>>, vector<1x64x65xf32>
    %12 = vector.shape_cast %11 : vector<1x64x65xf32> to vector<64x65xf32>
    %13 = vector.extract_strided_slice %12 {offsets = [0, 0], sizes = [64, 64], strides = [1, 1]} : vector<64x65xf32> to vector<64x64xf32>
    %14 = vector.extract_strided_slice %12 {offsets = [0, 64], sizes = [64, 1], strides = [1, 1]} : vector<64x65xf32> to vector<64x1xf32>
    %cst_9 = arith.constant dense<0.000000e+00> : vector<64x128xf32>
    %15 = tpu.matmul %13, %10, %cst_9 {dimension_numbers = #tpu.dot_dimension_numbers<[1], [0], [0], [1], [0, 0, 1, 1], [], []>} : vector<64x64xf32>, vector<64x128xf32>, vector<64x128xf32> -> vector<64x128xf32>
    %16 = vector.broadcast %14 : vector<64x1xf32> to vector<64x128xf32>
    %17 = arith.addf %15, %16 : vector<64x128xf32>
    %cst_10 = arith.constant 0.000000e+00 : f32
    %18 = vector.broadcast %cst_10 : f32 to vector<64x128xf32>
    %19 = arith.maximumf %17, %18 : vector<64x128xf32>
    %c0_11 = arith.constant 0 : index
    %c0_12 = arith.constant 0 : index
    %c0_13 = arith.constant 0 : index
    %20 = vector.load %arg4[%c0_11, %c0_12, %c0_13] : memref<3x16x65xf32, #tpu.memory_space<vmem>>, vector<1x16x65xf32>
    %21 = vector.shape_cast %20 : vector<1x16x65xf32> to vector<16x65xf32>
    %22 = vector.extract_strided_slice %21 {offsets = [0, 0], sizes = [16, 64], strides = [1, 1]} : vector<16x65xf32> to vector<16x64xf32>
    %23 = vector.extract_strided_slice %21 {offsets = [0, 64], sizes = [16, 1], strides = [1, 1]} : vector<16x65xf32> to vector<16x1xf32>
    %cst_14 = arith.constant dense<0.000000e+00> : vector<16x128xf32>
    %24 = tpu.matmul %22, %19, %cst_14 {dimension_numbers = #tpu.dot_dimension_numbers<[1], [0], [0], [1], [0, 0, 1, 1], [], []>} : vector<16x64xf32>, vector<64x128xf32>, vector<16x128xf32> -> vector<16x128xf32>
    %25 = vector.broadcast %23 : vector<16x1xf32> to vector<16x128xf32>
    %26 = arith.addf %24, %25 : vector<16x128xf32>
    %27 = vector.extract_strided_slice %26 {offsets = [0, 0], sizes = [8, 128], strides = [1, 1]} : vector<16x128xf32> to vector<8x128xf32>
    %28 = vector.extract_strided_slice %26 {offsets = [8, 0], sizes = [8, 128], strides = [1, 1]} : vector<16x128xf32> to vector<8x128xf32>
    %29 = arith.subf %0, %27 : vector<8x128xf32>
    %cst_15 = arith.constant 0.000000e+00 : f32
    %30 = vector.broadcast %cst_15 : f32 to vector<8x128xf32>
    %31 = arith.subf %30, %28 : vector<8x128xf32>
    %32 = math.exp %31 : vector<8x128xf32>
    %33 = arith.mulf %29, %32 : vector<8x128xf32>
    %cst_16 = arith.constant dense<0.000000e+00> : vector<128xf32>
    %34 = vector.multi_reduction <add>, %28, %cst_16 [0] : vector<8x128xf32> to vector<128xf32>
    %35 = vector.shape_cast %34 : vector<128xf32> to vector<1x128xf32>
    %36 = arith.addf %1, %35 : vector<1x128xf32>
    %c1 = arith.constant 1 : index
    %c0_17 = arith.constant 0 : index
    %c0_18 = arith.constant 0 : index
    %37 = vector.load %arg2[%c1, %c0_17, %c0_18] : memref<3x64x9xf32, #tpu.memory_space<vmem>>, vector<1x64x9xf32>
    %38 = vector.shape_cast %37 : vector<1x64x9xf32> to vector<64x9xf32>
    %39 = vector.extract_strided_slice %38 {offsets = [0, 0], sizes = [64, 8], strides = [1, 1]} : vector<64x9xf32> to vector<64x8xf32>
    %40 = vector.extract_strided_slice %38 {offsets = [0, 8], sizes = [64, 1], strides = [1, 1]} : vector<64x9xf32> to vector<64x1xf32>
    %cst_19 = arith.constant dense<0.000000e+00> : vector<64x128xf32>
    %41 = tpu.matmul %39, %33, %cst_19 {dimension_numbers = #tpu.dot_dimension_numbers<[1], [0], [0], [1], [0, 0, 1, 1], [], []>} : vector<64x8xf32>, vector<8x128xf32>, vector<64x128xf32> -> vector<64x128xf32>
    %42 = vector.broadcast %40 : vector<64x1xf32> to vector<64x128xf32>
    %43 = arith.addf %41, %42 : vector<64x128xf32>
    %cst_20 = arith.constant 0.000000e+00 : f32
    %44 = vector.broadcast %cst_20 : f32 to vector<64x128xf32>
    %45 = arith.maximumf %43, %44 : vector<64x128xf32>
    %c1_21 = arith.constant 1 : index
    %c0_22 = arith.constant 0 : index
    %c0_23 = arith.constant 0 : index
    %46 = vector.load %arg3[%c1_21, %c0_22, %c0_23] : memref<3x64x65xf32, #tpu.memory_space<vmem>>, vector<1x64x65xf32>
    %47 = vector.shape_cast %46 : vector<1x64x65xf32> to vector<64x65xf32>
    %48 = vector.extract_strided_slice %47 {offsets = [0, 0], sizes = [64, 64], strides = [1, 1]} : vector<64x65xf32> to vector<64x64xf32>
    %49 = vector.extract_strided_slice %47 {offsets = [0, 64], sizes = [64, 1], strides = [1, 1]} : vector<64x65xf32> to vector<64x1xf32>
    %cst_24 = arith.constant dense<0.000000e+00> : vector<64x128xf32>
    %50 = tpu.matmul %48, %45, %cst_24 {dimension_numbers = #tpu.dot_dimension_numbers<[1], [0], [0], [1], [0, 0, 1, 1], [], []>} : vector<64x64xf32>, vector<64x128xf32>, vector<64x128xf32> -> vector<64x128xf32>
    %51 = vector.broadcast %49 : vector<64x1xf32> to vector<64x128xf32>
    %52 = arith.addf %50, %51 : vector<64x128xf32>
    %cst_25 = arith.constant 0.000000e+00 : f32
    %53 = vector.broadcast %cst_25 : f32 to vector<64x128xf32>
    %54 = arith.maximumf %52, %53 : vector<64x128xf32>
    %c1_26 = arith.constant 1 : index
    %c0_27 = arith.constant 0 : index
    %c0_28 = arith.constant 0 : index
    %55 = vector.load %arg4[%c1_26, %c0_27, %c0_28] : memref<3x16x65xf32, #tpu.memory_space<vmem>>, vector<1x16x65xf32>
    %56 = vector.shape_cast %55 : vector<1x16x65xf32> to vector<16x65xf32>
    %57 = vector.extract_strided_slice %56 {offsets = [0, 0], sizes = [16, 64], strides = [1, 1]} : vector<16x65xf32> to vector<16x64xf32>
    %58 = vector.extract_strided_slice %56 {offsets = [0, 64], sizes = [16, 1], strides = [1, 1]} : vector<16x65xf32> to vector<16x1xf32>
    %cst_29 = arith.constant dense<0.000000e+00> : vector<16x128xf32>
    %59 = tpu.matmul %57, %54, %cst_29 {dimension_numbers = #tpu.dot_dimension_numbers<[1], [0], [0], [1], [0, 0, 1, 1], [], []>} : vector<16x64xf32>, vector<64x128xf32>, vector<16x128xf32> -> vector<16x128xf32>
    %60 = vector.broadcast %58 : vector<16x1xf32> to vector<16x128xf32>
    %61 = arith.addf %59, %60 : vector<16x128xf32>
    %62 = vector.extract_strided_slice %61 {offsets = [0, 0], sizes = [8, 128], strides = [1, 1]} : vector<16x128xf32> to vector<8x128xf32>
    %63 = vector.extract_strided_slice %61 {offsets = [8, 0], sizes = [8, 128], strides = [1, 1]} : vector<16x128xf32> to vector<8x128xf32>
    %64 = arith.subf %33, %62 : vector<8x128xf32>
    %cst_30 = arith.constant 0.000000e+00 : f32
    %65 = vector.broadcast %cst_30 : f32 to vector<8x128xf32>
    %66 = arith.subf %65, %63 : vector<8x128xf32>
    %67 = math.exp %66 : vector<8x128xf32>
    %68 = arith.mulf %64, %67 : vector<8x128xf32>
    %cst_31 = arith.constant dense<0.000000e+00> : vector<128xf32>
    %69 = vector.multi_reduction <add>, %63, %cst_31 [0] : vector<8x128xf32> to vector<128xf32>
    %70 = vector.shape_cast %69 : vector<128xf32> to vector<1x128xf32>
    %71 = arith.addf %36, %70 : vector<1x128xf32>
    %c2 = arith.constant 2 : index
    %c0_32 = arith.constant 0 : index
    %c0_33 = arith.constant 0 : index
    %72 = vector.load %arg2[%c2, %c0_32, %c0_33] : memref<3x64x9xf32, #tpu.memory_space<vmem>>, vector<1x64x9xf32>
    %73 = vector.shape_cast %72 : vector<1x64x9xf32> to vector<64x9xf32>
    %74 = vector.extract_strided_slice %73 {offsets = [0, 0], sizes = [64, 8], strides = [1, 1]} : vector<64x9xf32> to vector<64x8xf32>
    %75 = vector.extract_strided_slice %73 {offsets = [0, 8], sizes = [64, 1], strides = [1, 1]} : vector<64x9xf32> to vector<64x1xf32>
    %cst_34 = arith.constant dense<0.000000e+00> : vector<64x128xf32>
    %76 = tpu.matmul %74, %68, %cst_34 {dimension_numbers = #tpu.dot_dimension_numbers<[1], [0], [0], [1], [0, 0, 1, 1], [], []>} : vector<64x8xf32>, vector<8x128xf32>, vector<64x128xf32> -> vector<64x128xf32>
    %77 = vector.broadcast %75 : vector<64x1xf32> to vector<64x128xf32>
    %78 = arith.addf %76, %77 : vector<64x128xf32>
    %cst_35 = arith.constant 0.000000e+00 : f32
    %79 = vector.broadcast %cst_35 : f32 to vector<64x128xf32>
    %80 = arith.maximumf %78, %79 : vector<64x128xf32>
    %c2_36 = arith.constant 2 : index
    %c0_37 = arith.constant 0 : index
    %c0_38 = arith.constant 0 : index
    %81 = vector.load %arg3[%c2_36, %c0_37, %c0_38] : memref<3x64x65xf32, #tpu.memory_space<vmem>>, vector<1x64x65xf32>
    %82 = vector.shape_cast %81 : vector<1x64x65xf32> to vector<64x65xf32>
    %83 = vector.extract_strided_slice %82 {offsets = [0, 0], sizes = [64, 64], strides = [1, 1]} : vector<64x65xf32> to vector<64x64xf32>
    %84 = vector.extract_strided_slice %82 {offsets = [0, 64], sizes = [64, 1], strides = [1, 1]} : vector<64x65xf32> to vector<64x1xf32>
    %cst_39 = arith.constant dense<0.000000e+00> : vector<64x128xf32>
    %85 = tpu.matmul %83, %80, %cst_39 {dimension_numbers = #tpu.dot_dimension_numbers<[1], [0], [0], [1], [0, 0, 1, 1], [], []>} : vector<64x64xf32>, vector<64x128xf32>, vector<64x128xf32> -> vector<64x128xf32>
    %86 = vector.broadcast %84 : vector<64x1xf32> to vector<64x128xf32>
    %87 = arith.addf %85, %86 : vector<64x128xf32>
    %cst_40 = arith.constant 0.000000e+00 : f32
    %88 = vector.broadcast %cst_40 : f32 to vector<64x128xf32>
    %89 = arith.maximumf %87, %88 : vector<64x128xf32>
    %c2_41 = arith.constant 2 : index
    %c0_42 = arith.constant 0 : index
    %c0_43 = arith.constant 0 : index
    %90 = vector.load %arg4[%c2_41, %c0_42, %c0_43] : memref<3x16x65xf32, #tpu.memory_space<vmem>>, vector<1x16x65xf32>
    %91 = vector.shape_cast %90 : vector<1x16x65xf32> to vector<16x65xf32>
    %92 = vector.extract_strided_slice %91 {offsets = [0, 0], sizes = [16, 64], strides = [1, 1]} : vector<16x65xf32> to vector<16x64xf32>
    %93 = vector.extract_strided_slice %91 {offsets = [0, 64], sizes = [16, 1], strides = [1, 1]} : vector<16x65xf32> to vector<16x1xf32>
    %cst_44 = arith.constant dense<0.000000e+00> : vector<16x128xf32>
    %94 = tpu.matmul %92, %89, %cst_44 {dimension_numbers = #tpu.dot_dimension_numbers<[1], [0], [0], [1], [0, 0, 1, 1], [], []>} : vector<16x64xf32>, vector<64x128xf32>, vector<16x128xf32> -> vector<16x128xf32>
    %95 = vector.broadcast %93 : vector<16x1xf32> to vector<16x128xf32>
    %96 = arith.addf %94, %95 : vector<16x128xf32>
    %97 = vector.extract_strided_slice %96 {offsets = [0, 0], sizes = [8, 128], strides = [1, 1]} : vector<16x128xf32> to vector<8x128xf32>
    %98 = vector.extract_strided_slice %96 {offsets = [8, 0], sizes = [8, 128], strides = [1, 1]} : vector<16x128xf32> to vector<8x128xf32>
    %99 = arith.subf %68, %97 : vector<8x128xf32>
    %cst_45 = arith.constant 0.000000e+00 : f32
    %100 = vector.broadcast %cst_45 : f32 to vector<8x128xf32>
    %101 = arith.subf %100, %98 : vector<8x128xf32>
    %102 = math.exp %101 : vector<8x128xf32>
    %103 = arith.mulf %99, %102 : vector<8x128xf32>
    %cst_46 = arith.constant dense<0.000000e+00> : vector<128xf32>
    %104 = vector.multi_reduction <add>, %98, %cst_46 [0] : vector<8x128xf32> to vector<128xf32>
    %105 = vector.shape_cast %104 : vector<128xf32> to vector<1x128xf32>
    %106 = arith.addf %71, %105 : vector<1x128xf32>
    %c0_47 = arith.constant 0 : index
    %c0_48 = arith.constant 0 : index
    %107 = vector.load %arg5[%c0_47, %c0_48] : memref<8x128xf32, #tpu.memory_space<vmem>>, vector<8x128xf32>
    tpu.vector_store %arg5[%c0_47, %c0_48], %103 {strides = array<i32>} : memref<8x128xf32, #tpu.memory_space<vmem>>, vector<8x128xf32>,
    %c0_49 = arith.constant 0 : index
    %c0_50 = arith.constant 0 : index
    %108 = vector.load %arg6[%c0_49, %c0_50] : memref<1x128xf32, #tpu.memory_space<vmem>>, vector<1x128xf32>
    tpu.vector_store %arg6[%c0_49, %c0_50], %106 {strides = array<i32>} : memref<1x128xf32, #tpu.memory_space<vmem>>, vector<1x128xf32>,
    return
  }
  func.func @transform_0(%arg0: i32) -> (i32, i32) {
    %c0_i32 = arith.constant 0 : i32
    %c0_i32_0 = arith.constant 0 : i32
    return %c0_i32, %arg0 : i32, i32
  }
  func.func @transform_1(%arg0: i32) -> (i32, i32, i32) {
    %c0_i32 = arith.constant 0 : i32
    %c0_i32_0 = arith.constant 0 : i32
    %c0_i32_1 = arith.constant 0 : i32
    %c0_i32_2 = arith.constant 0 : i32
    return %c0_i32, %c0_i32_0, %c0_i32_1 : i32, i32, i32
  }
  func.func @transform_2(%arg0: i32) -> (i32, i32, i32) {
    %c0_i32 = arith.constant 0 : i32
    %c0_i32_0 = arith.constant 0 : i32
    %c0_i32_1 = arith.constant 0 : i32
    %c0_i32_2 = arith.constant 0 : i32
    return %c0_i32, %c0_i32_0, %c0_i32_1 : i32, i32, i32
  }
  func.func @transform_3(%arg0: i32) -> (i32, i32, i32) {
    %c0_i32 = arith.constant 0 : i32
    %c0_i32_0 = arith.constant 0 : i32
    %c0_i32_1 = arith.constant 0 : i32
    %c0_i32_2 = arith.constant 0 : i32
    return %c0_i32, %c0_i32_0, %c0_i32_1 : i32, i32, i32
  }
  func.func @transform_4(%arg0: i32) -> (i32, i32) {
    %c0_i32 = arith.constant 0 : i32
    %c0_i32_0 = arith.constant 0 : i32
    return %c0_i32, %arg0 : i32, i32
  }
  func.func @transform_5(%arg0: i32) -> (i32, i32) {
    %c0_i32 = arith.constant 0 : i32
    %c0_i32_0 = arith.constant 0 : i32
    return %c0_i32, %arg0 : i32, i32
  }
}

</mosaic_0001>

<bundles_post_ra>
// kernel: tpu_custom_call.1
= control target key start
LH: loop header
LB: loop body
LE: loop exit
PB: predicated region body
PF: predicated region fallthrough
CT: control target
= control target key end

     0   :  { %11 = vsyncpa [#allocation3], 0  ;;  %s1408_s0 = inlined_call_operand.vmem [shape: f32[8,128], index: 0, kind: input, shape index: {}]   ;;  %s1409_s1 = inlined_call_operand.vmem [shape: f32[3,64,9], index: 1, kind: input, shape index: {}]   ;;  %s1410_s2 = inlined_call_operand.vmem [shape: f32[3,64,65], index: 2, kind: input, shape index: {}]   ;;  %s1411_s3 = inlined_call_operand.hbm [shape: f32[3,16,65], index: 3, kind: input, shape index: {}]   ;;  %s1412_s4 = inlined_call_operand.hbm [shape: f32[8,128], index: 4, kind: output, shape index: {0}]   ;;  %s1413_s5 = inlined_call_operand.hbm [shape: f32[1,128], index: 5, kind: output, shape index: {1}]  }
   0x1   :  { %12 = vsyncpa [#allocation4], 0 }
   0x2   :  { %13 = vsyncpa [#allocation7], 0  ;;  %s24_s20 = sshll.u32 %s1411_s3, 4  ;;  %s1115_s21 = smov [#allocation2]   ;;  %s25_s20 = int_to_ptr.hbm [resolvable:$true] %s24_s20 }
   0x3   :  { %s26_s22 = sshll.u32 %s1115_s21, 4  ;;  %s1116_s23 = smov 128   ;;  %s27_s22 = int_to_ptr.vmem [resolvable:$true] %s26_s22 }
   0x4   :  { %s1117_s24 = smov 8  }
   0x5   :  { %32 = dma.hbm_to_vmem [thread:$0]  %s25_s20, 768, %s27_s22, [#allocation3], %s1116_s23, %s1116_s23, %s1117_s24  }
   0x6   :  { %1109 = dma.done.wait [#allocation3], 768  }
   0x7   :  { %1110 = vsyncadd [#allocation3], 4294966528  ;;  %v1118_v0 = vmov 8   ;;  %vm86_vm0 = vcmask 64512   ;;  %v43_v1 = vld [vmem:[%s1409_s1 + $0x28] sm:$0xff]  ;;  %v1164_v2 = vld [vmem:[%s1408_s0] sm:$0xff] }
   0x8   :  { %1014 = vset.pattern.permute.xlu1 %v1118_v0  ;;  %1013 = vset.pattern.permute.xlu0 %v1118_v0  ;;  %v38_v3 = vld [vmem:[%s1409_s1] sm:$0xff]  ;;  %v45_v4 = vld [vmem:[%s1409_s1 + $0x38] sm:$0xff]  ;;  %v39_v7 = vld [vmem:[%s1409_s1 + $0x8] sm:$0xff]  ;;  %v1119_v16 = vmov 64   ;;  %vm200_vm1 = vcmask 523264   ;;  %s886_s17 = sshll.u32 %s1412_s4, 4  ;;  %s887_s17 = int_to_ptr.hbm [resolvable:$true] %s886_s17 }
   0x9   :  { %1015 = vset.pattern.permute.xlu2 %v1118_v0  ;;  %73 = vperm.xlu1 %1014, %v43_v1   ;;  %v41_v5 = vld [vmem:[%s1409_s1 + $0x18] sm:$0xff]  ;;  %v42_v6 = vld [vmem:[%s1409_s1 + $0x20] sm:$0xff]  ;;  %v44_v8 = vld [vmem:[%s1409_s1 + $0x30] sm:$0xff]  ;;  %s1121_s18 = smov [#allocation6]   ;;  %s897_s22 = sshll.u32 %s1413_s5, 4  ;;  %s898_s22 = int_to_ptr.hbm [resolvable:$true] %s897_s22 }
   0xa   :  { %118 = vmatpush.msra.mxu0 %v1164_v2  ;;  %83 = vperm.xlu0 %1013, %v45_v4   ;;  %v40_v9 = vld [vmem:[%s1409_s1 + $0x10] sm:$0xff]  ;;  %v1199_v15 = vld [vmem:[%s1410_s2 + $0x28] sm:$0xff]  ;;  %v1208_v19 = vld [vmem:[%s1410_s2 + $0x18] sm:$0xff]  ;;  %s895_s19 = sshll.u32 %s1121_s18, 4  ;;  %s896_s19 = int_to_ptr.vmem [resolvable:$true] %s895_s19 }
   0xb   :  { %912 = vmatmul.msk.f32.vlgmr.msra.gmra.mxu0 %vm86_vm0, %v38_v3  ;;  %63 = vperm.xlu2 %1015, %v41_v5   ;;  %v158_v22 = vld [vmem:[%s1410_s2 + $0x30] sm:$0xff]  ;;  %v152_v25 = vld [vmem:[%s1410_s2] sm:$0xff]  ;;  %v153_v32 = vld [vmem:[%s1410_s2 + $0x8] sm:$0xff] }
   0xc   :  { %v159_v33 = vld [vmem:[%s1410_s2 + $0x38] sm:$0xff]  ;;  %v156_v47 = vld [vmem:[%s1410_s2 + $0x20] sm:$0xff]  ;;  %v154_v51 = vld [vmem:[%s1410_s2 + $0x10] sm:$0xff] }
   0xd   :  { %v266_v50 = vld [vmem:[#allocation2] sm:$0xff]  ;;  %v267_v52 = vld [vmem:[#allocation2 + $0x8] sm:$0xff] }
  0x11   :  { %68 = vperm.xlu1 %1014, %v42_v6  }
  0x12   :  { %78 = vperm.xlu0 %1013, %v44_v8  }
  0x13   :  { %913 = vmatmul.msk.f32.gmra.mxu0 %vm86_vm0, %v39_v7  ;;  %58 = vperm.xlu2 %1015, %v40_v9  }
  0x19   :  { %48 = vperm.xlu1 %1014, %v38_v3  }
  0x1a   :  { %53 = vperm.xlu0 %1013, %v39_v7  }
  0x1b   :  { %914 = vmatmul.msk.f32.gmra.mxu0 %vm86_vm0, %v40_v9  ;;  %1016 = vset.pattern.permute.xlu2 %v1119_v16 }
  0x1c   :  { %197 = vperm.xlu2 %1016, %v159_v33  }
  0x21   :  { %1018 = vset.pattern.permute.xlu1 %v1119_v16 }
  0x22   :  { %1017 = vset.pattern.permute.xlu0 %v1119_v16  ;;  %187 = vperm.xlu1 %1018, %v1199_v15  }
  0x23   :  { %915 = vmatmul.msk.f32.gmra.mxu0 %vm86_vm0, %v41_v5  ;;  %192 = vperm.xlu0 %1017, %v158_v22  }
  0x24   :  { %182 = vperm.xlu2 %1016, %v156_v47  }
  0x2a   :  { %177 = vperm.xlu1 %1018, %v1208_v19  }
  0x2b   :  { %916 = vmatmul.msk.f32.gmra.mxu0 %vm86_vm0, %v42_v6  ;;  %167 = vperm.xlu0 %1017, %v153_v32  }
  0x2c   :  { %172 = vperm.xlu2 %1016, %v154_v51  }
  0x32   :  { %162 = vperm.xlu1 %1018, %v152_v25  }
  0x33   :  { %917 = vmatmul.msk.f32.gmra.mxu0 %vm86_vm0, %v43_v1  ;;  %270 = vperm.xlu0 %1017, %v266_v50  }
  0x34   :  { %275 = vperm.xlu2 %1016, %v267_v52  }
  0x3a   :  { %1019 = vset.pattern.permute.xlu1 %v1118_v0 }
  0x3b   :  { %918 = vmatmul.msk.f32.gmra.mxu0 %vm86_vm0, %v44_v8  ;;  %1021 = vset.pattern.permute.xlu0 %v1118_v0 }
  0x3c   :  { %1020 = vset.pattern.permute.xlu2 %v1118_v0 }
  0x43   :  { %919 = vmatmul.msk.f32.gmra.mxu0 %vm86_vm0, %v45_v4 }
  0x65   :  { %v64_v23 = vpop.permute.xlu2 %63 }
  0x6d   :  { %v59_v36 = vpop.permute.xlu2 %58 }
  0x76   :  { %v198_v56 = vpop.permute.xlu2 %197 }
  0x7b   :  { %v74_v20 = vpop.permute.xlu1 %73 }
  0x7c   :  { %v84_v18 = vpop.permute.xlu0 %83 }
  0x7e   :  { %v183_v1 = vpop.permute.xlu2 %182 }
  0x83   :  { %v69_v26 = vpop.permute.xlu1 %68 }
  0x84   :  { %v79_v24 = vpop.permute.xlu0 %78 }
  0x88   :  { %v120_v10 = vpop.f32.mrf.mxu0 }
  0x8b   :  { %v49_v42 = vpop.permute.xlu1 %48 }
  0x8c   :  { %v54_v39 = vpop.permute.xlu0 %53  ;;  %v121_v45 = vadd.f32 %v120_v10, %v49_v42 }
  0x8e   :  { %v144_v49 = vmax.f32 %v121_v45, 0.0 }
  0x90   :  { %v123_v11 = vpop.f32.mrf.mxu0 }
  0x91   :  { %v124_v43 = vadd.f32 %v123_v11, %v54_v39  ;;  %v932_v39 = vld [vmem:[%s1409_s1 + $0x50] sm:$0xff] }
  0x93   :  { %v145_v48 = vmax.f32 %v124_v43, 0.0 }
  0x94   :  { %v188_v58 = vpop.permute.xlu1 %187 }
  0x95   :  { %v193_v60 = vpop.permute.xlu0 %192 }
  0x98   :  { %v126_v12 = vpop.f32.mrf.mxu0 }
  0x99   :  { %v127_v40 = vadd.f32 %v126_v12, %v59_v36 }
  0x9b   :  { %v146_v46 = vmax.f32 %v127_v40, 0.0  ;;  %v936_v40 = vld [vmem:[%s1409_s1 + $0x70] sm:$0xff] }
  0x9c   :  { %v178_v6 = vpop.permute.xlu1 %177  ;;  %358 = vperm.xlu2 %1020, %v936_v40  }
  0x9d   :  { %v168_v12 = vpop.permute.xlu0 %167 }
  0xa0   :  { %v129_v13 = vpop.f32.mrf.mxu0 }
  0xa1   :  { %v130_v37 = vadd.f32 %v129_v13, %v64_v23  ;;  %v173_v13 = vpop.permute.xlu2 %172 }
  0xa3   :  { %v147_v44 = vmax.f32 %v130_v37, 0.0 }
  0xa8   :  { %v132_v14 = vpop.f32.mrf.mxu0 }
  0xa9   :  { %v133_v34 = vadd.f32 %v132_v14, %v69_v26  ;;  %v276_v26 = vpop.permute.xlu2 %275 }
  0xab   :  { %v148_v41 = vmax.f32 %v133_v34, 0.0 }
  0xb0   :  { %v135_v17 = vpop.f32.mrf.mxu0 }
  0xb1   :  { %v136_v30 = vadd.f32 %v135_v17, %v74_v20  ;;  %v163_v17 = vpop.permute.xlu1 %162 }
  0xb3   :  { %v149_v38 = vmax.f32 %v136_v30, 0.0  ;;  %v937_v30 = vld [vmem:[%s1409_s1 + $0x78] sm:$0xff] }
  0xb4   :  { %363 = vperm.xlu1 %1019, %v937_v30  }
  0xb8   :  { %v138_v21 = vpop.f32.mrf.mxu0 }
  0xb9   :  { %v139_v28 = vadd.f32 %v138_v21, %v79_v24 }
  0xbb   :  { %v150_v35 = vmax.f32 %v139_v28, 0.0 }
  0xc0   :  { %v141_v27 = vpop.f32.mrf.mxu0 }
  0xc1   :  { %v142_v29 = vadd.f32 %v141_v27, %v84_v18 }
  0xc3   :  { %v151_v31 = vmax.f32 %v142_v29, 0.0  ;;  %v930_v29 = vld [vmem:[%s1409_s1 + $0x40] sm:$0xff] }
  0xc5   :  { %225 = vmatpush.msra.mxu1 %v151_v31  ;;  %998 = vmatpush.msra.mxu2 %v151_v31 }
  0xc7   :  { %226 = vmatpush.msra.mxu1 %v150_v35  ;;  %999 = vmatpush.msra.mxu2 %v150_v35  ;;  %v934_v35 = vld [vmem:[%s1409_s1 + $0x60] sm:$0xff] }
  0xc8   :  { %348 = vperm.xlu1 %1019, %v934_v35  }
  0xc9   :  { %227 = vmatpush.msra.mxu1 %v149_v38  ;;  %1000 = vmatpush.msra.mxu2 %v149_v38 }
  0xcb   :  { %228 = vmatpush.msra.mxu1 %v148_v41  ;;  %1001 = vmatpush.msra.mxu2 %v148_v41  ;;  %v933_v41 = vld [vmem:[%s1409_s1 + $0x58] sm:$0xff] }
  0xcc   :  { %343 = vperm.xlu2 %1020, %v933_v41  }
  0xcd   :  { %229 = vmatpush.msra.mxu1 %v147_v44  ;;  %1002 = vmatpush.msra.mxu2 %v147_v44 }
  0xcf   :  { %230 = vmatpush.msra.mxu1 %v146_v46  ;;  %1003 = vmatpush.msra.mxu2 %v146_v46 }
  0xd0   :  { %338 = vperm.xlu1 %1019, %v932_v39  }
  0xd1   :  { %231 = vmatpush.msra.mxu1 %v145_v48  ;;  %1004 = vmatpush.msra.mxu2 %v145_v48 }
  0xd3   :  { %232 = vmatpush.msra.mxu1 %v144_v49  ;;  %1005 = vmatpush.msra.mxu2 %v144_v49 }
  0xd4   :  { %920 = vmatmul.msk.f32.vlgmr.msra.gmra.mxu1 %vm200_vm1, %v152_v25  ;;  %925 = vmatmul.msk.f32.vlgmr.msra.gmra.mxu2 %vm200_vm1, %v1199_v15  ;;  %v935_v25 = vld [vmem:[%s1409_s1 + $0x68] sm:$0xff] }
  0xd5   :  { %353 = vperm.xlu0 %1021, %v935_v25  }
  0xd8   :  { %1022 = vset.pattern.permute.xlu1 %v1119_v16 }
  0xdc   :  { %921 = vmatmul.msk.f32.gmra.mxu1 %vm200_vm1, %v153_v32  ;;  %926 = vmatmul.msk.f32.gmra.mxu2 %vm200_vm1, %v158_v22 }
  0xdd   :  { %328 = vperm.xlu0 %1021, %v930_v29  }
  0xe4   :  { %922 = vmatmul.msk.f32.gmra.mxu1 %vm200_vm1, %v154_v51  ;;  %927 = vmatmul.msk.f32.gmra.mxu2 %vm200_vm1, %v159_v33  ;;  %v271_v33 = vpop.permute.xlu0 %270 }
  0xe5   :  { %1024 = vset.pattern.permute.xlu0 %v1119_v16 }
  0xec   :  { %923 = vmatmul.msk.f32.gmra.mxu1 %vm200_vm1, %v1208_v19 }
  0xf4   :  { %924 = vmatmul.msk.f32.gmra.mxu1 %vm200_vm1, %v156_v47 }
  0xf6   :  { %v359_v49 = vpop.permute.xlu2 %358 }
 0x126   :  { %v364_v48 = vpop.permute.xlu1 %363 }
 0x13a   :  { %v349_v51 = vpop.permute.xlu1 %348 }
 0x151   :  { %v234_v53 = vpop.f32.mrf.mxu1 }
 0x152   :  { %v235_v20 = vadd.f32 %v234_v53, %v163_v17  ;;  %v344_v53 = vpop.permute.xlu2 %343  ;;  %v952_v17 = vld [vmem:[%s1410_s2 + $0x70] sm:$0xff] }
 0x154   :  { %v258_v23 = vmax.f32 %v235_v20, 0.0  ;;  %v949_v20 = vld [vmem:[%s1410_s2 + $0x58] sm:$0xff] }
 0x157   :  { %v249_v54 = vpop.f32.mrf.mxu2 }
 0x158   :  { %v250_v4 = vadd.f32 %v249_v54, %v188_v58  ;;  %v354_v54 = vpop.permute.xlu0 %353 }
 0x159   :  { %v237_v55 = vpop.f32.mrf.mxu1 }
 0x15a   :  { %v263_v8 = vmax.f32 %v250_v4, 0.0  ;;  %v238_v18 = vadd.f32 %v237_v55, %v168_v12 }
 0x15c   :  { %v259_v22 = vmax.f32 %v238_v18, 0.0  ;;  %v948_v18 = vld [vmem:[%s1410_s2 + $0x50] sm:$0xff] }
 0x15f   :  { %v252_v57 = vpop.f32.mrf.mxu2 }
 0x160   :  { %v253_v62 = vadd.f32 %v252_v57, %v193_v60  ;;  %v946_v60 = vld [vmem:[%s1410_s2 + $0x40] sm:$0xff] }
 0x161   :  { %v240_v59 = vpop.f32.mrf.mxu1 }
 0x162   :  { %v264_v7 = vmax.f32 %v253_v62, 0.0  ;;  %v241_v14 = vadd.f32 %v240_v59, %v173_v13 }
 0x164   :  { %v260_v21 = vmax.f32 %v241_v14, 0.0 }
 0x167   :  { %v255_v61 = vpop.f32.mrf.mxu2 }
 0x168   :  { %v256_v63 = vadd.f32 %v255_v61, %v198_v56  ;;  %v953_v61 = vld [vmem:[%s1410_s2 + $0x78] sm:$0xff] }
 0x169   :  { %v243_v3 = vpop.f32.mrf.mxu1  ;;  %477 = vperm.xlu1 %1022, %v953_v61  }
 0x16a   :  { %v265_v5 = vmax.f32 %v256_v63, 0.0  ;;  %v244_v10 = vadd.f32 %v243_v3, %v178_v6 }
 0x16c   :  { %290 = vmatpush.msrb.mxu2 %v265_v5  ;;  %v261_v19 = vmax.f32 %v244_v10, 0.0 }
 0x16e   :  { %291 = vmatpush.msrb.mxu2 %v264_v7 }
 0x170   :  { %292 = vmatpush.msrb.mxu2 %v263_v8  ;;  %v329_v8 = vpop.permute.xlu0 %328 }
 0x171   :  { %v246_v9 = vpop.f32.mrf.mxu1 }
 0x172   :  { %v247_v11 = vadd.f32 %v246_v9, %v183_v1  ;;  %v339_v1 = vpop.permute.xlu1 %338 }
 0x174   :  { %v262_v15 = vmax.f32 %v247_v11, 0.0  ;;  %v950_v11 = vld [vmem:[%s1410_s2 + $0x60] sm:$0xff] }
 0x175   :  { %462 = vperm.xlu1 %1022, %v950_v11  }
 0x176   :  { %293 = vmatpush.msrb.mxu2 %v262_v15 }
 0x178   :  { %294 = vmatpush.msrb.mxu2 %v261_v19  ;;  %v947_v19 = vld [vmem:[%s1410_s2 + $0x48] sm:$0xff] }
 0x17a   :  { %295 = vmatpush.msrb.mxu2 %v260_v21  ;;  %v547_v21 = vld [vmem:[#allocation2 + $0x18] sm:$0xff] }
 0x17c   :  { %296 = vmatpush.msrb.mxu2 %v259_v22  ;;  %v546_v22 = vld [vmem:[#allocation2 + $0x10] sm:$0xff] }
 0x17d   :  { %452 = vperm.xlu1 %1022, %v948_v18  }
 0x17e   :  { %297 = vmatpush.msrb.mxu2 %v258_v23 }
 0x17f   :  { %928 = vmatmul.msk.f32.vlgmr.msrb.gmra.mxu2 %vm200_vm1, %v266_v50 }
 0x185   :  { %555 = vperm.xlu1 %1022, %v547_v21  }
 0x187   :  { %929 = vmatmul.msk.f32.gmra.mxu2 %vm200_vm1, %v267_v52  ;;  %v951_v52 = vld [vmem:[%s1410_s2 + $0x68] sm:$0xff] }
 0x188   :  { %467 = vperm.xlu0 %1024, %v951_v52  }
 0x18d   :  { %1026 = vset.pattern.permute.xlu1 %v1118_v0 }
 0x190   :  { %442 = vperm.xlu0 %1024, %v946_v60  }
 0x198   :  { %1025 = vset.pattern.permute.xlu0 %v1118_v0 }
 0x202   :  { %v299_v24 = vpop.f32.mrf.mxu2 }
 0x203   :  { %v300_v34 = vadd.f32 %v299_v24, %v271_v33 }
 0x205   :  { %v305_v36 = vsub.f32 %v1164_v2, %v300_v34  ;;  %v931_v2 = vld [vmem:[%s1409_s1 + $0x48] sm:$0xff] }
 0x206   :  { %333 = vperm.xlu2 %1020, %v931_v2  }
 0x20a   :  { %v302_v27 = vpop.f32.mrf.mxu2 }
 0x20b   :  { %v1247_v28 = vadd.f32 %v302_v27, %v276_v26 }
 0x20d   :  { %v306_v31 = vsub.f32 0.0, %v1247_v28 }
 0x20e   :  { %1023 = vset.pattern.permute.xlu2 %v1119_v16 }
 0x20f   :  { %v307_v32 = vmul.f32 1.442695, %v306_v31  ;;  %472 = vperm.xlu2 %1023, %v952_v17  }
 0x211   :  { %1031 = vpow2.f32 %v307_v32 }
 0x217   :  { %v1032_v37 = vpop.eup %1031  ;;  %457 = vperm.xlu2 %1023, %v949_v20  }
 0x218   :  { %v1261_v38 = vmul.f32 %v1032_v37, %v305_v36 }
 0x21a   :  { %397 = vmatpush.msra.mxu3 %v1261_v38 }
 0x21b   :  { %938 = vmatmul.msk.f32.vlgmr.msra.gmra.mxu3 %vm86_vm0, %v930_v29 }
 0x21f   :  { %447 = vperm.xlu2 %1023, %v947_v19  }
 0x223   :  { %939 = vmatmul.msk.f32.gmra.mxu3 %vm86_vm0, %v931_v2 }
 0x227   :  { %550 = vperm.xlu2 %1023, %v546_v22  }
 0x22b   :  { %940 = vmatmul.msk.f32.gmra.mxu3 %vm86_vm0, %v932_v39 }
 0x22f   :  { %1027 = vset.pattern.permute.xlu2 %v1118_v0 }
 0x233   :  { %941 = vmatmul.msk.f32.gmra.mxu3 %vm86_vm0, %v933_v41 }
 0x23b   :  { %942 = vmatmul.msk.f32.gmra.mxu3 %vm86_vm0, %v934_v35  ;;  %v468_v35 = vpop.permute.xlu0 %467 }
 0x243   :  { %943 = vmatmul.msk.f32.gmra.mxu3 %vm86_vm0, %v935_v25 }
 0x24b   :  { %944 = vmatmul.msk.f32.gmra.mxu3 %vm86_vm0, %v936_v40 }
 0x253   :  { %945 = vmatmul.msk.f32.gmra.mxu3 %vm86_vm0, %v937_v30  ;;  %v478_v30 = vpop.permute.xlu1 %477 }
 0x25b   :  { %v463_v33 = vpop.permute.xlu1 %462 }
 0x260   :  { %v334_v5 = vpop.permute.xlu2 %333 }
 0x269   :  { %v473_v31 = vpop.permute.xlu2 %472 }
 0x271   :  { %v458_v34 = vpop.permute.xlu2 %457 }
 0x29e   :  { %v399_v42 = vpop.f32.mrf.mxu3 }
 0x29f   :  { %v400_v12 = vadd.f32 %v399_v42, %v329_v8  ;;  %v453_v42 = vpop.permute.xlu1 %452 }
 0x2a1   :  { %v423_v15 = vmax.f32 %v400_v12, 0.0  ;;  %v971_v12 = vld [vmem:[%s1409_s1 + $0xb8] sm:$0xff] }
 0x2a2   :  { %643 = vperm.xlu0 %1025, %v971_v12  }
 0x2a6   :  { %v402_v43 = vpop.f32.mrf.mxu3 }
 0x2a7   :  { %v403_v9 = vadd.f32 %v402_v43, %v334_v5 }
 0x2a9   :  { %v424_v14 = vmax.f32 %v403_v9, 0.0 }
 0x2ae   :  { %v405_v44 = vpop.f32.mrf.mxu3 }
 0x2af   :  { %v406_v6 = vadd.f32 %v405_v44, %v339_v1 }
 0x2b1   :  { %v425_v13 = vmax.f32 %v406_v6, 0.0 }
 0x2b6   :  { %v408_v45 = vpop.f32.mrf.mxu3 }
 0x2b7   :  { %v409_v3 = vadd.f32 %v408_v45, %v344_v53  ;;  %v448_v45 = vpop.permute.xlu2 %447 }
 0x2b9   :  { %v426_v10 = vmax.f32 %v409_v3, 0.0 }
 0x2be   :  { %v411_v46 = vpop.f32.mrf.mxu3 }
 0x2bf   :  { %v412_v62 = vadd.f32 %v411_v46, %v349_v51 }
 0x2c1   :  { %v427_v7 = vmax.f32 %v412_v62, 0.0 }
 0x2c6   :  { %v414_v47 = vpop.f32.mrf.mxu3 }
 0x2c7   :  { %v415_v58 = vadd.f32 %v414_v47, %v354_v54 }
 0x2c9   :  { %v428_v4 = vmax.f32 %v415_v58, 0.0 }
 0x2ce   :  { %v417_v50 = vpop.f32.mrf.mxu3 }
 0x2cf   :  { %v418_v56 = vadd.f32 %v417_v50, %v359_v49 }
 0x2d1   :  { %v429_v63 = vmax.f32 %v418_v56, 0.0  ;;  %v310_v56 = vrot.slane %v1247_v28, 4 }
 0x2d3   :  { %v311_v58 = vadd.f32 %v310_v56, %v1247_v28 }
 0x2d6   :  { %v420_v55 = vpop.f32.mrf.mxu3 }
 0x2d7   :  { %v421_v57 = vadd.f32 %v420_v55, %v364_v48  ;;  %v443_v48 = vpop.permute.xlu0 %442 }
 0x2d9   :  { %v430_v59 = vmax.f32 %v421_v57, 0.0  ;;  %v970_v57 = vld [vmem:[%s1409_s1 + $0xb0] sm:$0xff] }
 0x2da   :  { %638 = vperm.xlu1 %1026, %v970_v57  }
 0x2db   :  { %504 = vmatpush.msra.mxu2 %v430_v59  ;;  %v556_v59 = vpop.permute.xlu1 %555 }
 0x2dd   :  { %505 = vmatpush.msra.mxu2 %v429_v63  ;;  %v968_v63 = vld [vmem:[%s1409_s1 + $0xa0] sm:$0xff] }
 0x2df   :  { %506 = vmatpush.msra.mxu2 %v428_v4 }
 0x2e1   :  { %507 = vmatpush.msra.mxu2 %v427_v7  ;;  %v551_v7 = vpop.permute.xlu2 %550 }
 0x2e2   :  { %628 = vperm.xlu1 %1026, %v968_v63  }
 0x2e3   :  { %508 = vmatpush.msra.mxu2 %v426_v10 }
 0x2e5   :  { %509 = vmatpush.msra.mxu2 %v425_v13  ;;  %v965_v13 = vld [vmem:[%s1409_s1 + $0x88] sm:$0xff] }
 0x2e7   :  { %510 = vmatpush.msra.mxu2 %v424_v14 }
 0x2e9   :  { %511 = vmatpush.msra.mxu2 %v423_v15 }
 0x2ea   :  { %954 = vmatmul.msk.f32.vlgmr.msra.gmra.mxu2 %vm200_vm1, %v946_v60  ;;  %613 = vperm.xlu1 %1026, %v965_v13  }
 0x2f2   :  { %955 = vmatmul.msk.f32.gmra.mxu2 %vm200_vm1, %v947_v19  ;;  %1029 = vset.pattern.permute.xlu1 %v1119_v16 }
 0x2fa   :  { %956 = vmatmul.msk.f32.gmra.mxu2 %vm200_vm1, %v948_v18 }
 0x302   :  { %957 = vmatmul.msk.f32.gmra.mxu2 %vm200_vm1, %v949_v20 }
 0x30a   :  { %958 = vmatmul.msk.f32.gmra.mxu2 %vm200_vm1, %v950_v11  ;;  %v969_v11 = vld [vmem:[%s1409_s1 + $0xa8] sm:$0xff] }
 0x30b   :  { %633 = vperm.xlu2 %1027, %v969_v11  }
 0x312   :  { %959 = vmatmul.msk.f32.gmra.mxu2 %vm200_vm1, %v951_v52 }
 0x31a   :  { %960 = vmatmul.msk.f32.gmra.mxu2 %vm200_vm1, %v952_v17 }
 0x322   :  { %961 = vmatmul.msk.f32.gmra.mxu2 %vm200_vm1, %v953_v61  ;;  %v312_v61 = vrot.slane %v311_v58, 2 }
 0x324   :  { %v313_v4 = vadd.f32 %v312_v61, %v311_v58  ;;  %v982_v58 = vld [vmem:[%s1410_s2 + $0x90] sm:$0xff] }
 0x326   :  { %v314_v10 = vrot.slane %v313_v4, 1 }
 0x328   :  { %v315_v18 = vadd.f32 %v314_v10, %v313_v4 }
 0x36d   :  { %v513_v23 = vpop.f32.mrf.mxu2 }
 0x36e   :  { %v514_v51 = vadd.f32 %v513_v23, %v443_v48  ;;  %v966_v23 = vld [vmem:[%s1409_s1 + $0x90] sm:$0xff] }
 0x36f   :  { %618 = vperm.xlu0 %1025, %v966_v23  }
 0x370   :  { %v537_v54 = vmax.f32 %v514_v51, 0.0 }
 0x375   :  { %v516_v24 = vpop.f32.mrf.mxu2 }
 0x376   :  { %v517_v49 = vadd.f32 %v516_v24, %v448_v45  ;;  %v985_v45 = vld [vmem:[%s1410_s2 + $0xa8] sm:$0xff] }
 0x377   :  { %1028 = vset.pattern.permute.xlu0 %v1119_v16 }
 0x378   :  { %v538_v53 = vmax.f32 %v517_v49, 0.0  ;;  %v981_v49 = vld [vmem:[%s1410_s2 + $0x88] sm:$0xff] }
 0x37d   :  { %v519_v25 = vpop.f32.mrf.mxu2 }
 0x37e   :  { %v520_v46 = vadd.f32 %v519_v25, %v453_v42 }
 0x380   :  { %v539_v52 = vmax.f32 %v520_v46, 0.0  ;;  %v987_v46 = vld [vmem:[%s1410_s2 + $0xb8] sm:$0xff] }
 0x381   :  { %757 = vperm.xlu0 %1028, %v987_v46  }
 0x385   :  { %v522_v26 = vpop.f32.mrf.mxu2 }
 0x386   :  { %v523_v43 = vadd.f32 %v522_v26, %v458_v34  ;;  %v644_v34 = vpop.permute.xlu0 %643 }
 0x388   :  { %v540_v50 = vmax.f32 %v523_v43, 0.0 }
 0x389   :  { %732 = vperm.xlu0 %1028, %v982_v58  }
 0x38d   :  { %v525_v27 = vpop.f32.mrf.mxu2 }
 0x38e   :  { %v526_v2 = vadd.f32 %v525_v27, %v463_v33 }
 0x390   :  { %v541_v47 = vmax.f32 %v526_v2, 0.0 }
 0x395   :  { %v528_v29 = vpop.f32.mrf.mxu2 }
 0x396   :  { %v529_v39 = vadd.f32 %v528_v29, %v468_v35 }
 0x398   :  { %v542_v44 = vmax.f32 %v529_v39, 0.0 }
 0x39d   :  { %v531_v32 = vpop.f32.mrf.mxu2 }
 0x39e   :  { %v532_v0 = vadd.f32 %v531_v32, %v473_v31  ;;  %v639_v31 = vpop.permute.xlu1 %638  ;;  %v634_v32 = vpop.permute.xlu2 %633 }
 0x3a0   :  { %v543_v41 = vmax.f32 %v532_v0, 0.0 }
 0x3a5   :  { %v534_v36 = vpop.f32.mrf.mxu2 }
 0x3a6   :  { %v535_v37 = vadd.f32 %v534_v36, %v478_v30  ;;  %v629_v35 = vpop.permute.xlu1 %628  ;;  %v984_v36 = vld [vmem:[%s1410_s2 + $0xa0] sm:$0xff] }
 0x3a8   :  { %v544_v40 = vmax.f32 %v535_v37, 0.0 }
 0x3aa   :  { %570 = vmatpush.msrb.mxu0 %v544_v40 }
 0x3ac   :  { %571 = vmatpush.msrb.mxu0 %v543_v41 }
 0x3ae   :  { %572 = vmatpush.msrb.mxu0 %v542_v44 }
 0x3b0   :  { %573 = vmatpush.msrb.mxu0 %v541_v47 }
 0x3b2   :  { %574 = vmatpush.msrb.mxu0 %v540_v50  ;;  %v614_v50 = vpop.permute.xlu1 %613 }
 0x3b4   :  { %575 = vmatpush.msrb.mxu0 %v539_v52 }
 0x3b6   :  { %576 = vmatpush.msrb.mxu0 %v538_v53 }
 0x3b8   :  { %577 = vmatpush.msrb.mxu0 %v537_v54 }
 0x3b9   :  { %962 = vmatmul.msk.f32.vlgmr.msrb.gmra.mxu0 %vm200_vm1, %v546_v22 }
 0x3c1   :  { %963 = vmatmul.msk.f32.gmra.mxu0 %vm200_vm1, %v547_v21  ;;  %v964_v21 = vld [vmem:[%s1409_s1 + $0x80] sm:$0xff] }
 0x3e1   :  { %v619_v44 = vpop.permute.xlu0 %618 }
 0x436   :  { %v579_v55 = vpop.f32.mrf.mxu0 }
 0x437   :  { %v580_v9 = vadd.f32 %v579_v55, %v551_v7 }
 0x439   :  { %v585_v15 = vsub.f32 %v1261_v38, %v580_v9  ;;  %v967_v38 = vld [vmem:[%s1409_s1 + $0x98] sm:$0xff] }
 0x43a   :  { %623 = vperm.xlu2 %1027, %v967_v38  }
 0x43e   :  { %v582_v60 = vpop.f32.mrf.mxu0 }
 0x43f   :  { %v583_v62 = vadd.f32 %v582_v60, %v556_v59  ;;  %v983_v60 = vld [vmem:[%s1410_s2 + $0x98] sm:$0xff] }
 0x441   :  { %v586_v1 = vsub.f32 0.0, %v583_v62  ;;  %v590_v3 = vrot.slane %v583_v62, 4 }
 0x442   :  { %608 = vperm.xlu2 %1027, %v964_v21  }
 0x443   :  { %v587_v5 = vmul.f32 1.442695, %v586_v1  ;;  %v591_v6 = vadd.f32 %v590_v3, %v583_v62  ;;  %v980_v62 = vld [vmem:[%s1410_s2 + $0x80] sm:$0xff]  ;;  %v827_v1 = vld [vmem:[#allocation2 + $0x28] sm:$0xff] }
 0x444   :  { %835 = vperm.xlu0 %1028, %v827_v1  }
 0x445   :  { %1033 = vpow2.f32 %v587_v5  ;;  %v592_v8 = vrot.slane %v591_v6, 2 }
 0x447   :  { %v593_v28 = vadd.f32 %v592_v8, %v591_v6 }
 0x449   :  { %v594_v14 = vrot.slane %v593_v28, 1 }
 0x44a   :  { %1030 = vset.pattern.permute.xlu2 %v1119_v16  ;;  %v986_v16 = vld [vmem:[%s1410_s2 + $0xb0] sm:$0xff]  ;;  %s1120_s2 = smov [#allocation5]  }
 0x44b   :  { %v1034_v17 = vpop.eup %1033  ;;  %v595_v19 = vadd.f32 %v594_v14, %v593_v28  ;;  %752 = vperm.xlu1 %1029, %v986_v16   ;;  %747 = vperm.xlu2 %1030, %v985_v45   ;;  %s884_s14 = sshll.u32 %s1120_s2, 4  ;;  %s885_s14 = int_to_ptr.vmem [resolvable:$true] %s884_s14 }
 0x44c   :  { %v1341_v20 = vmul.f32 %v1034_v17, %v585_v15 }
 0x44d   :  { %v1346_v22 = vadd.f32 %v595_v19, %v315_v18 }
 0x44e   :  { %677 = vmatpush.msrb.mxu3 %v1341_v20 }
 0x44f   :  { %972 = vmatmul.msk.f32.vlgmr.msrb.gmra.mxu3 %vm86_vm0, %v964_v21 }
 0x453   :  { %742 = vperm.xlu1 %1029, %v984_v36   ;;  %737 = vperm.xlu2 %1030, %v983_v60  }
 0x457   :  { %973 = vmatmul.msk.f32.gmra.mxu3 %vm86_vm0, %v965_v13 }
 0x45b   :  { %727 = vperm.xlu1 %1029, %v981_v49   ;;  %722 = vperm.xlu2 %1030, %v980_v62  }
 0x45f   :  { %974 = vmatmul.msk.f32.gmra.mxu3 %vm86_vm0, %v966_v23 }
 0x467   :  { %975 = vmatmul.msk.f32.gmra.mxu3 %vm86_vm0, %v967_v38 }
 0x46f   :  { %976 = vmatmul.msk.f32.gmra.mxu3 %vm86_vm0, %v968_v63  ;;  %v826_v63 = vld [vmem:[#allocation2 + $0x20] sm:$0xff] }
 0x470   :  { %830 = vperm.xlu1 %1029, %v826_v63  }
 0x477   :  { %977 = vmatmul.msk.f32.gmra.mxu3 %vm86_vm0, %v969_v11  ;;  %v758_v11 = vpop.permute.xlu0 %757 }
 0x47f   :  { %978 = vmatmul.msk.f32.gmra.mxu3 %vm86_vm0, %v970_v57  ;;  %v733_v38 = vpop.permute.xlu0 %732 }
 0x487   :  { %979 = vmatmul.msk.f32.gmra.mxu3 %vm86_vm0, %v971_v12 }
 0x494   :  { %v624_v0 = vpop.permute.xlu2 %623 }
 0x49c   :  { %v609_v53 = vpop.permute.xlu2 %608 }
 0x4a5   :  { %v748_v10 = vpop.permute.xlu2 %747 }
 0x4ad   :  { %v738_v13 = vpop.permute.xlu2 %737 }
 0x4bd   :  { %v753_v9 = vpop.permute.xlu1 %752 }
 0x4c5   :  { %v743_v12 = vpop.permute.xlu1 %742 }
 0x4d2   :  { %v679_v24 = vpop.f32.mrf.mxu3 }
 0x4d3   :  { %v680_v56 = vadd.f32 %v679_v24, %v609_v53 }
 0x4d5   :  { %v703_v61 = vmax.f32 %v680_v56, 0.0 }
 0x4da   :  { %v682_v25 = vpop.f32.mrf.mxu3 }
 0x4db   :  { %v683_v55 = vadd.f32 %v682_v25, %v614_v50 }
 0x4dd   :  { %v704_v59 = vmax.f32 %v683_v55, 0.0 }
 0x4e2   :  { %v685_v26 = vpop.f32.mrf.mxu3 }
 0x4e3   :  { %v686_v52 = vadd.f32 %v685_v26, %v619_v44  ;;  %v728_v26 = vpop.permute.xlu1 %727 }
 0x4e5   :  { %v705_v57 = vmax.f32 %v686_v52, 0.0 }
 0x4ea   :  { %v688_v27 = vpop.f32.mrf.mxu3 }
 0x4eb   :  { %v689_v47 = vadd.f32 %v688_v27, %v624_v0  ;;  %v836_v0 = vpop.permute.xlu0 %835 }
 0x4ed   :  { %v706_v54 = vmax.f32 %v689_v47, 0.0 }
 0x4f2   :  { %v691_v29 = vpop.f32.mrf.mxu3 }
 0x4f3   :  { %v692_v42 = vadd.f32 %v691_v29, %v629_v35 }
 0x4f5   :  { %v707_v51 = vmax.f32 %v692_v42, 0.0 }
 0x4fa   :  { %v694_v30 = vpop.f32.mrf.mxu3 }
 0x4fb   :  { %v695_v2 = vadd.f32 %v694_v30, %v634_v32  ;;  %v723_v30 = vpop.permute.xlu2 %722 }
 0x4fd   :  { %v708_v48 = vmax.f32 %v695_v2, 0.0 }
 0x502   :  { %v697_v33 = vpop.f32.mrf.mxu3 }
 0x503   :  { %v698_v39 = vadd.f32 %v697_v33, %v639_v31 }
 0x505   :  { %v709_v43 = vmax.f32 %v698_v39, 0.0 }
 0x50a   :  { %v700_v37 = vpop.f32.mrf.mxu3 }
 0x50b   :  { %v701_v40 = vadd.f32 %v700_v37, %v644_v34 }
 0x50d   :  { %v710_v41 = vmax.f32 %v701_v40, 0.0 }
 0x50f   :  { %784 = vmatpush.msrb.mxu1 %v710_v41 }
 0x511   :  { %785 = vmatpush.msrb.mxu1 %v709_v43  ;;  %v831_v43 = vpop.permute.xlu1 %830 }
 0x513   :  { %786 = vmatpush.msrb.mxu1 %v708_v48 }
 0x515   :  { %787 = vmatpush.msrb.mxu1 %v707_v51 }
 0x517   :  { %788 = vmatpush.msrb.mxu1 %v706_v54 }
 0x519   :  { %789 = vmatpush.msrb.mxu1 %v705_v57 }
 0x51b   :  { %790 = vmatpush.msrb.mxu1 %v704_v59 }
 0x51d   :  { %791 = vmatpush.msrb.mxu1 %v703_v61 }
 0x51e   :  { %988 = vmatmul.msk.f32.vlgmr.msrb.gmra.mxu1 %vm200_vm1, %v980_v62 }
 0x526   :  { %989 = vmatmul.msk.f32.gmra.mxu1 %vm200_vm1, %v981_v49 }
 0x52e   :  { %990 = vmatmul.msk.f32.gmra.mxu1 %vm200_vm1, %v982_v58 }
 0x536   :  { %991 = vmatmul.msk.f32.gmra.mxu1 %vm200_vm1, %v983_v60 }
 0x53e   :  { %992 = vmatmul.msk.f32.gmra.mxu1 %vm200_vm1, %v984_v36 }
 0x546   :  { %993 = vmatmul.msk.f32.gmra.mxu1 %vm200_vm1, %v985_v45 }
 0x54e   :  { %994 = vmatmul.msk.f32.gmra.mxu1 %vm200_vm1, %v986_v16 }
 0x556   :  { %995 = vmatmul.msk.f32.gmra.mxu1 %vm200_vm1, %v987_v46 }
 0x59b   :  { %v793_v3 = vpop.f32.mrf.mxu1 }
 0x59c   :  { %v794_v16 = vadd.f32 %v793_v3, %v723_v30 }
 0x59e   :  { %v817_v35 = vmax.f32 %v794_v16, 0.0 }
 0x5a3   :  { %v796_v4 = vpop.f32.mrf.mxu1 }
 0x5a4   :  { %v797_v32 = vadd.f32 %v796_v4, %v728_v26 }
 0x5a6   :  { %v818_v34 = vmax.f32 %v797_v32, 0.0 }
 0x5ab   :  { %v799_v5 = vpop.f32.mrf.mxu1 }
 0x5ac   :  { %v800_v29 = vadd.f32 %v799_v5, %v733_v38 }
 0x5ae   :  { %v819_v33 = vmax.f32 %v800_v29, 0.0 }
 0x5b3   :  { %v802_v6 = vpop.f32.mrf.mxu1 }
 0x5b4   :  { %v803_v25 = vadd.f32 %v802_v6, %v738_v13 }
 0x5b6   :  { %v820_v31 = vmax.f32 %v803_v25, 0.0 }
 0x5bb   :  { %v805_v7 = vpop.f32.mrf.mxu1 }
 0x5bc   :  { %v806_v23 = vadd.f32 %v805_v7, %v743_v12 }
 0x5be   :  { %v821_v27 = vmax.f32 %v806_v23, 0.0 }
 0x5c3   :  { %v808_v8 = vpop.f32.mrf.mxu1 }
 0x5c4   :  { %v809_v18 = vadd.f32 %v808_v8, %v748_v10 }
 0x5c6   :  { %v822_v24 = vmax.f32 %v809_v18, 0.0 }
 0x5cb   :  { %v811_v28 = vpop.f32.mrf.mxu1 }
 0x5cc   :  { %v812_v15 = vadd.f32 %v811_v28, %v753_v9 }
 0x5ce   :  { %v823_v21 = vmax.f32 %v812_v15, 0.0 }
 0x5d3   :  { %v814_v14 = vpop.f32.mrf.mxu1 }
 0x5d4   :  { %v815_v17 = vadd.f32 %v814_v14, %v758_v11 }
 0x5d6   :  { %v824_v19 = vmax.f32 %v815_v17, 0.0 }
 0x5d8   :  { %850 = vmatpush.msra.mxu0 %v824_v19 }
 0x5da   :  { %851 = vmatpush.msra.mxu0 %v823_v21 }
 0x5dc   :  { %852 = vmatpush.msra.mxu0 %v822_v24 }
 0x5de   :  { %853 = vmatpush.msra.mxu0 %v821_v27 }
 0x5e0   :  { %854 = vmatpush.msra.mxu0 %v820_v31 }
 0x5e2   :  { %855 = vmatpush.msra.mxu0 %v819_v33 }
 0x5e4   :  { %856 = vmatpush.msra.mxu0 %v818_v34 }
 0x5e6   :  { %857 = vmatpush.msra.mxu0 %v817_v35 }
 0x5e7   :  { %996 = vmatmul.msk.f32.vlgmr.msra.gmra.mxu0 %vm200_vm1, %v826_v63 }
 0x5ef   :  { %997 = vmatmul.msk.f32.gmra.mxu0 %vm200_vm1, %v827_v1 }
 0x664   :  { %v859_v36 = vpop.f32.mrf.mxu0 }
 0x665   :  { %v860_v45 = vadd.f32 %v859_v36, %v831_v43 }
 0x667   :  { %v865_v48 = vsub.f32 %v1341_v20, %v860_v45 }
 0x66c   :  { %v862_v37 = vpop.f32.mrf.mxu0 }
 0x66d   :  { %v863_v39 = vadd.f32 %v862_v37, %v836_v0 }
 0x66f   :  { %v866_v40 = vsub.f32 0.0, %v863_v39  ;;  %v870_v2 = vrot.slane %v863_v39, 4 }
 0x671   :  { %v867_v41 = vmul.f32 1.442695, %v866_v40  ;;  %v871_v42 = vadd.f32 %v870_v2, %v863_v39 }
 0x673   :  { %1035 = vpow2.f32 %v867_v41  ;;  %v872_v44 = vrot.slane %v871_v42, 2 }
 0x675   :  { %v873_v46 = vadd.f32 %v872_v44, %v871_v42 }
 0x677   :  { %v874_v47 = vrot.slane %v873_v46, 1 }
 0x679   :  { %v1036_v49 = vpop.eup %1035  ;;  %v875_v50 = vadd.f32 %v874_v47, %v873_v46 }
 0x67a   :  { %v869_v51 = vmul.f32 %v1036_v49, %v865_v48 }
 0x67b   :  { %v876_v52 = vadd.f32 %v875_v50, %v1346_v22 }
 0x67c   :  { %877 = vst [vmem:[#allocation5] sm:$0xff] %v869_v51 }
 0x67d   :  { %889 = dma.vmem_to_hbm [thread:$0]  %s885_s14, 128, %s887_s17, [#allocation4]   ;;  %878 = vst [vmem:[#allocation6] sm:$0x1] %v876_v52 }
 0x67e   :  { %900 = dma.vmem_to_hbm [thread:$0]  %s896_s19, 16, %s898_s22, [#allocation7]  }
 0x67f   :  { %1111 = dma.done.wait [#allocation4], 128  }
 0x680   :  { %1112 = vsyncadd [#allocation4], 4294967168 }
 0x681   :  { %1113 = dma.done.wait [#allocation7], 16  }
 0x682   :  { %1114 = vsyncadd [#allocation7], 4294967280 }
 0x683   :  { %909 = vsyncpa [#allocation3], 1 }
 0x684   :  { %910 = vsyncpa [#allocation4], 1 }
 0x685   :  { %911 = vsyncpa [#allocation7], 1 }

</bundles_post_ra>
